<compile_context>
chip_gen: v7x
topology: tpu7x:2x2x1
jax: 0.10.0
libtpu: 0.0.40
codegen_flags: <defaults>
</compile_context>

<pallas_src>
import math

import jax
import jax.numpy as jnp
from jax.experimental import pallas as pl
from jax.experimental.pallas import tpu as pltpu


def _round_up(x, m):
    return ((x + m - 1) // m) * m


def _largest_tile(padded, cap, step=128):
    """Largest multiple of `step` that divides `padded` and is <= cap."""
    t = min(cap, padded)
    t -= t % step
    while t >= step:
        if padded % t == 0:
            return t
        t -= step
    return min(padded, cap)


# ----------------------------- Pallas kernel --------------------------------
def _linear_kernel(x_ref, w_ref, b_ref, o_ref):
    """One (tm, tk) @ (tk, tn) MXU step of a K-tiled matmul.

    Accumulates directly into the fp32 output tile (its block index is invariant
    in k, so it is VMEM-resident across the K axis); bias is added on the last step.
    """
    k = pl.program_id(2)

    @pl.when(k == 0)
    def _():
        o_ref[...] = jnp.zeros_like(o_ref)

    o_ref[...] += jnp.dot(x_ref[...], w_ref[...], preferred_element_type=jnp.float32)

    @pl.when(k == pl.num_programs(2) - 1)
    def _():
        o_ref[...] += b_ref[...]


def pallas_linear(x2d, w_t, b, *, tm, tn, tk, vmem_limit_bytes=48 * 1024 * 1024):
    """x2d: [Mp, Kp], w_t: [Kp, Np], b: [1, Np] -> fp32 [Mp, Np]."""
    Mp, Kp = x2d.shape
    Kp2, Np = w_t.shape
    assert Kp == Kp2 and Mp % tm == 0 and Np % tn == 0 and Kp % tk == 0

    grid = (Mp // tm, Np // tn, Kp // tk)

    return pl.pallas_call(
        _linear_kernel,
        out_shape=jax.ShapeDtypeStruct((Mp, Np), jnp.float32),
        grid_spec=pltpu.PrefetchScalarGridSpec(
            num_scalar_prefetch=0,
            grid=grid,
            in_specs=[
                pl.BlockSpec((tm, tk), lambda i, j, k: (i, k)),   # activation tile
                pl.BlockSpec((tk, tn), lambda i, j, k: (k, j)),   # weight tile
                pl.BlockSpec((1, tn), lambda i, j, k: (0, j)),    # bias tile
            ],
            out_specs=pl.BlockSpec((tm, tn), lambda i, j, k: (i, j)),
        ),
        compiler_params=pltpu.CompilerParams(
            dimension_semantics=("parallel", "parallel", "arbitrary"),
            # Worst case double-buffered footprint with the caps below is
            # ~16 MiB (bf16 operands) / ~28 MiB (fp32), under 48 MiB and well
            # under v7x's 64 MiB physical VMEM.
            vmem_limit_bytes=vmem_limit_bytes,
        ),
    )(x2d, w_t, b)


# ------------------------- Module-equivalent wrappers ------------------------
class LinearModule:
    """Equivalent of nn.Linear(in_features, out_features) whose forward runs in Pallas."""

    TM_CAP = 1024   # row-tile cap
    TN_CAP = 512    # output-column tile cap
    TK_CAP = 2048   # contraction tile cap

    def __init__(self, in_features, out_features, key, compute_dtype=jnp.bfloat16):
        kw, kb = jax.random.split(key)
        bound = 1.0 / math.sqrt(in_features)
        self.weight = jax.random.uniform(
            kw, (out_features, in_features), jnp.float32, -bound, bound
        )
        self.bias = jax.random.uniform(kb, (out_features,), jnp.float32, -bound, bound)
        self.in_features = in_features
        self.out_features = out_features
        self.compute_dtype = compute_dtype

        # ---- K (contraction) tile plan: pad only to a 128 multiple if tiling K. ----
        K = in_features
        if K <= self.TK_CAP:
            Kp, tk = K, K                         # whole K in one tile, no padding
        else:
            Kp = K if K % 128 == 0 else _round_up(K, 128)
            tk = _largest_tile(Kp, self.TK_CAP)

        # ---- N (output) tile plan: pad only to a 128 multiple when tiling N. ----
        N = out_features
        if N <= self.TN_CAP:
            Np, tn = N, N                         # no padding, lane dim == full dim
        elif N % 128 == 0:
            Np, tn = N, _largest_tile(N, self.TN_CAP)
        else:
            Np = _round_up(N, 128)
            tn = _largest_tile(Np, self.TN_CAP)

        self._Kp, self._Np, self._tk, self._tn = Kp, Np, tk, tn

        # HBM-resident weights: transpose + pad + cast to the MXU compute dtype ONCE
        # at init (no per-call transpose, no per-grid-step cast, half the DMA bytes
        # when compute_dtype is bf16).
        w_t = self.weight.T
        if Kp != K or Np != N:
            w_t = jnp.pad(w_t, ((0, Kp - K), (0, Np - N)))
        self._w_t = w_t.astype(compute_dtype)

        b2d = self.bias.reshape(1, -1)
        if Np != N:
            b2d = jnp.pad(b2d, ((0, 0), (0, Np - N)))
        self._b = b2d.astype(jnp.float32)          # added to the fp32 accumulator

    def __call__(self, x):
        lead = x.shape[:-1]
        K = x.shape[-1]
        assert K == self.in_features
        M = int(math.prod(lead))
        x2d = x.reshape(M, K).astype(self.compute_dtype)

        Kp, Np, tk, tn = self._Kp, self._Np, self._tk, self._tn

        # ---- M tile plan: whole M in one tile when it fits, so every weight block is
        # DMA'd from HBM exactly once (weight-bandwidth roofline). ----
        if M <= self.TM_CAP:
            Mp, tm = M, M
        else:
            tm = self.TM_CAP
            Mp = _round_up(M, tm)

        # v7x: guarantee >=2 blocks on a 'parallel' axis when the problem is big
        # enough, so the second TensorCore is not idle.
        grid_m, grid_n = Mp // tm, Np // tn
        if grid_m == 1 and grid_n == 1 and M * Np >= 512 * 256:
            if Np % 256 == 0:
                tn = Np // 2
            else:
                tm = _round_up((Mp + 1) // 2, 8)
                Mp = 2 * tm

        if Mp != M or Kp != K:
            # TODO(synk): keep activations K-padded upstream to avoid this per-call pad
            # when in_features is not a 128 multiple and K is tiled (rare path).
            x2d = jnp.pad(x2d, ((0, Mp - M), (0, Kp - K)))

        out = pallas_linear(x2d, self._w_t, self._b, tm=tm, tn=tn, tk=tk)
        out = out[:M, : self.out_features]
        return out.reshape(*lead, self.out_features)


class UniformEpsilonRule:
    """JAX/Pallas port: forward-pass semantics of the PyTorch UniformEpsilonRule.

    forward(*inputs) == wrapped_module(*inputs).  epsilon only affects the custom
    backward (uniform epsilon-LRP relevance propagation), which is outside the
    forward semantics.
    """

    def __init__(self, module, epsilon=1e-6):
        self.module = module
        self.epsilon = epsilon
        # TODO(synk): custom backward (uniform epsilon-LRP relevance propagation via
        # autograd.grad) not implemented; only the forward pass is reproduced.

    def __call__(self, *inputs):
        return self.module(*inputs)


# ----------------------------------- main ------------------------------------
if __name__ == "__main__":
    key = jax.random.PRNGKey(0)
    k_x, k_mod = jax.random.split(key)

    B, S, H = 2, 8, 32
    x = jax.random.normal(k_x, (B, S, H), jnp.float32)

    # Default path: bf16 MXU operands (HBM-resident bf16 weights), fp32 accumulation.
    module = LinearModule(H, H, k_mod)
    rule = UniformEpsilonRule(module, epsilon=1e-6)
    out = jax.block_until_ready(rule(x))

    ref = (x.reshape(B * S, H) @ module.weight.T + module.bias).reshape(B, S, H)
    assert out.shape == (B, S, H)
    assert out.dtype == jnp.float32
    # bf16 operands -> loosened tolerance against the fp32 reference.
    assert jnp.allclose(out, ref, atol=3e-2, rtol=3e-2), float(jnp.max(jnp.abs(out - ref)))

    # Full-precision path (same weights, fp32 operands) checked at tight tolerance.
    module_fp32 = LinearModule(H, H, k_mod, compute_dtype=jnp.float32)
    out_fp32 = jax.block_until_ready(UniformEpsilonRule(module_fp32, 1e-6)(x))
    ref_fp32 = (x.reshape(B * S, H) @ module_fp32.weight.T + module_fp32.bias).reshape(B, S, H)
    assert jnp.allclose(out_fp32, ref_fp32, atol=1e-5, rtol=1e-5)

    print("KERNEL_OK")
</pallas_src>

<mosaic_0001>
module attributes {stable_mosaic.version = 11 : i64} {
  func.func @_linear_kernel(%arg0: i32, %arg1: i32, %arg2: i32, %arg3: memref<16x32xbf16, #tpu.memory_space<vmem>>, %arg4: memref<32x32xbf16, #tpu.memory_space<vmem>>, %arg5: memref<1x32xf32, #tpu.memory_space<vmem>>, %arg6: memref<16x32xf32, #tpu.memory_space<vmem>>) attributes {dimension_semantics = [#tpu.dimension_semantics<parallel>, #tpu.dimension_semantics<parallel>, #tpu.dimension_semantics<arbitrary>], iteration_bounds = array<i64: 1, 1, 1>, scalar_prefetch = 0 : i64, scratch_operands = 0 : i64, tpu.core_type = #tpu.core_type<tc>, window_params = [{transform_indices = @transform_0, window_bounds = array<i64: 16, 32>}, {transform_indices = @transform_1, window_bounds = array<i64: 32, 32>}, {transform_indices = @transform_2, window_bounds = array<i64: 1, 32>}, {transform_indices = @transform_3, window_bounds = array<i64: 16, 32>}]} {
    %c0_i32 = arith.constant 0 : i32
    %0 = arith.cmpi eq, %arg2, %c0_i32 : i32
    %1 = arith.extui %0 : i1 to i32
    %c0_i32_0 = arith.constant 0 : i32
    %2 = arith.cmpi ne, %1, %c0_i32_0 : i32
    scf.if %2 {
      %cst_10 = arith.constant 0.000000e+00 : f32
      %12 = vector.broadcast %cst_10 : f32 to vector<16x32xf32>
      %c0_11 = arith.constant 0 : index
      %c0_12 = arith.constant 0 : index
      %13 = vector.load %arg6[%c0_11, %c0_12] : memref<16x32xf32, #tpu.memory_space<vmem>>, vector<16x32xf32>
      tpu.vector_store %arg6[%c0_11, %c0_12], %12 {strides = array<i32>} : memref<16x32xf32, #tpu.memory_space<vmem>>, vector<16x32xf32>,
    } else {
    }
    %c0 = arith.constant 0 : index
    %c0_1 = arith.constant 0 : index
    %3 = vector.load %arg6[%c0, %c0_1] : memref<16x32xf32, #tpu.memory_space<vmem>>, vector<16x32xf32>
    %c0_2 = arith.constant 0 : index
    %c0_3 = arith.constant 0 : index
    %4 = vector.load %arg3[%c0_2, %c0_3] : memref<16x32xbf16, #tpu.memory_space<vmem>>, vector<16x32xbf16>
    %c0_4 = arith.constant 0 : index
    %c0_5 = arith.constant 0 : index
    %5 = vector.load %arg4[%c0_4, %c0_5] : memref<32x32xbf16, #tpu.memory_space<vmem>>, vector<32x32xbf16>
    %cst = arith.constant dense<0.000000e+00> : vector<16x32xf32>
    %6 = tpu.matmul %4, %5, %cst {dimension_numbers = #tpu.dot_dimension_numbers<[1], [0], [0], [1], [0, 0, 1, 1], [], []>} : vector<16x32xbf16>, vector<32x32xbf16>, vector<16x32xf32> -> vector<16x32xf32>
    %7 = arith.addf %3, %6 : vector<16x32xf32>
    %c0_6 = arith.constant 0 : index
    %c0_7 = arith.constant 0 : index
    %8 = vector.load %arg6[%c0_6, %c0_7] : memref<16x32xf32, #tpu.memory_space<vmem>>, vector<16x32xf32>
    tpu.vector_store %arg6[%c0_6, %c0_7], %7 {strides = array<i32>} : memref<16x32xf32, #tpu.memory_space<vmem>>, vector<16x32xf32>,
    %c0_i32_8 = arith.constant 0 : i32
    %9 = arith.cmpi eq, %arg2, %c0_i32_8 : i32
    %10 = arith.extui %9 : i1 to i32
    %c0_i32_9 = arith.constant 0 : i32
    %11 = arith.cmpi ne, %10, %c0_i32_9 : i32
    scf.if %11 {
      %c0_10 = arith.constant 0 : index
      %c0_11 = arith.constant 0 : index
      %12 = vector.load %arg6[%c0_10, %c0_11] : memref<16x32xf32, #tpu.memory_space<vmem>>, vector<16x32xf32>
      %c0_12 = arith.constant 0 : index
      %c0_13 = arith.constant 0 : index
      %13 = vector.load %arg5[%c0_12, %c0_13] : memref<1x32xf32, #tpu.memory_space<vmem>>, vector<1x32xf32>
      %14 = vector.broadcast %13 : vector<1x32xf32> to vector<16x32xf32>
      %15 = arith.addf %12, %14 : vector<16x32xf32>
      %c0_14 = arith.constant 0 : index
      %c0_15 = arith.constant 0 : index
      %16 = vector.load %arg6[%c0_14, %c0_15] : memref<16x32xf32, #tpu.memory_space<vmem>>, vector<16x32xf32>
      tpu.vector_store %arg6[%c0_14, %c0_15], %15 {strides = array<i32>} : memref<16x32xf32, #tpu.memory_space<vmem>>, vector<16x32xf32>,
    } else {
    }
    return
  }
  func.func @transform_0(%arg0: i32, %arg1: i32, %arg2: i32) -> (i32, i32) {
    %c0_i32 = arith.constant 0 : i32
    return %arg0, %arg2 : i32, i32
  }
  func.func @transform_1(%arg0: i32, %arg1: i32, %arg2: i32) -> (i32, i32) {
    %c0_i32 = arith.constant 0 : i32
    return %arg2, %arg1 : i32, i32
  }
  func.func @transform_2(%arg0: i32, %arg1: i32, %arg2: i32) -> (i32, i32) {
    %c0_i32 = arith.constant 0 : i32
    %c0_i32_0 = arith.constant 0 : i32
    return %c0_i32, %arg1 : i32, i32
  }
  func.func @transform_3(%arg0: i32, %arg1: i32, %arg2: i32) -> (i32, i32) {
    %c0_i32 = arith.constant 0 : i32
    return %arg0, %arg1 : i32, i32
  }
}

</mosaic_0001>

<bundles_post_ra>
// kernel: tpu_custom_call.1
= control target key start
LH: loop header
LB: loop body
LE: loop exit
PB: predicated region body
PF: predicated region fallthrough
CT: control target
= control target key end

     0   :  { %8 = vsyncpa [#allocation3], 0  ;;  %s334_s0 = inlined_call_operand.hbm [shape: bf16[16,32], index: 0, kind: input, shape index: {}]   ;;  %s335_s1 = inlined_call_operand.hbm [shape: bf16[32,32], index: 1, kind: input, shape index: {}]   ;;  %s336_s2 = inlined_call_operand.vmem [shape: f32[1,32], index: 2, kind: input, shape index: {}]   ;;  %s337_s3 = inlined_call_operand.hbm [shape: f32[16,32], index: 3, kind: output, shape index: {}]  }
   0x1   :  { %9 = vsyncpa [#allocation6], 0 }
   0x2   :  { %10 = vsyncpa [#allocation4], 0  ;;  %s259_s12 = smov [#allocation2]   ;;  %s187_s16 = scalar_lea.hbm %s334_s0, 128 }
   0x3   :  { %s16_s13 = sshll.u32 %s259_s12, 4  ;;  %p188_p0 = scmp.ne.s32.totalorder %s334_s0, %s187_s16  ;;  %s17_s13 = int_to_ptr.vmem [resolvable:$true] %s16_s13 }
   0x4   :  { %p191_p1 = scmp.lt.u32.totalorder %s187_s16, %s334_s0 }
   0x6   :  { %p193_p2 = pnand %p191_p1, %p188_p0 }
   0x8   :  { %196 = shalt.err (!%p193_p2)
}
   0x9   :  { %s197_s21 = scalar_lea.vmem %s17_s13, 128  ;;  %p202_p4 = scmp.lt.s32.totalorder %s17_s13, %s17_s13 }
   0xa   :  { %p198_p3 = scmp.ne.s32.totalorder %s17_s13, %s197_s21  ;;  %p203_p5 = scmp.lt.s32.totalorder %s197_s21, %s197_s21 }
   0xc   :  { %p204_p6 = por %p203_p5, %p202_p4 }
   0xe   :  { %p205_p7 = pnand %p204_p6, %p198_p3 }
  0x10   :  { %208 = shalt.err (!%p205_p7)
}
  0x11   :  { %s260_s22 = smov 64   ;;  %s261_s23 = smov 4  }
  0x12   :  { %22 = dma.hbm_to_vmem [thread:$0]  %s334_s0, 128, %s17_s13, [#allocation3], %s260_s22, %s260_s22, %s261_s23  }
  0x13   :  { %s262_s26 = smov [#allocation5]   ;;  %s209_s30 = scalar_lea.hbm %s335_s1, 256 }
  0x14   :  { %s28_s27 = sshll.u32 %s262_s26, 4  ;;  %p210_p8 = scmp.ne.s32.totalorder %s335_s1, %s209_s30  ;;  %s29_s27 = int_to_ptr.vmem [resolvable:$true] %s28_s27 }
  0x15   :  { %p213_p9 = scmp.lt.u32.totalorder %s209_s30, %s335_s1 }
  0x17   :  { %p215_p10 = pnand %p213_p9, %p210_p8 }
  0x19   :  { %218 = shalt.err (!%p215_p10)
}
  0x1a   :  { %s219_s8 = scalar_lea.vmem %s29_s27, 256  ;;  %p224_p12 = scmp.lt.s32.totalorder %s29_s27, %s29_s27 }
  0x1b   :  { %p220_p11 = scmp.ne.s32.totalorder %s29_s27, %s219_s8  ;;  %p225_p13 = scmp.lt.s32.totalorder %s219_s8, %s219_s8 }
  0x1d   :  { %p226_p0 = por %p225_p13, %p224_p12 }
  0x1f   :  { %p227_p1 = pnand %p226_p0, %p220_p11 }
  0x21   :  { %230 = shalt.err (!%p227_p1)
}
  0x22   :  { %34 = dma.hbm_to_vmem [thread:$0]  %s335_s1, 256, %s29_s27, [#allocation6], %s260_s22, %s260_s22, %s261_s23  }
  0x23   :  { %253 = dma.done.wait [#allocation3], 128  }
  0x24   :  { %254 = vsyncadd [#allocation3], 4294967168 }
  0x25   :  { %255 = dma.done.wait [#allocation6], 256  }
  0x26   :  { %256 = vsyncadd [#allocation6], 4294967040  ;;  %vm48_vm0 = vcmask 261120   ;;  %v263_v0 = vmov 0.0   ;;  %vm264_vm1 = vmmov 0   ;;  %v184_v1 = vld [vmem:[#allocation5] sm:$0xff]  }
  0x27   :  { %167 = vmatprep.subr.bf16.mxu0 %v263_v0  ;;  %171 = vmatprep.mubr.msk.bf16.mxu0 %vm264_vm1, %v263_v0  ;;  %49 = vst.msk [vmem:[#allocation7] sm:$0xff] %vm48_vm0, %v263_v0  ;;  %50 = vst.msk [vmem:[#allocation7 + $0x8] sm:$0xff] %vm48_vm0, %v263_v0  ;;  %v185_v2 = vld [vmem:[#allocation5 + $0x8] sm:$0xff]   ;;  %v186_v3 = vld [vmem:[#allocation2] sm:$0xff]   ;;  %s265_s11 = smov [#allocation7]  }
  0x28   :  { %168 = vmatpush3.bf16.msra.mxu0 %v184_v1  ;;  %v163_v12 = vld [vmem:[%s336_s2] ss:$0 sm:$0xff]  ;;  %s146_s12 = sshll.u32 %s265_s11, 4  ;;  %s147_s12 = int_to_ptr.vmem [resolvable:$true] %s146_s12 }
  0x29   :  { %169 = vmatprep.subr.bf16.mxu0 %v263_v0  ;;  %s231_s13 = scalar_lea.vmem %s147_s12, 256  ;;  %p236_p3 = scmp.lt.s32.totalorder %s147_s12, %s147_s12 }
  0x2a   :  { %p232_p2 = scmp.ne.s32.totalorder %s147_s12, %s231_s13  ;;  %p237_p4 = scmp.lt.s32.totalorder %s231_s13, %s231_s13 }
  0x2c   :  { %170 = vmatpush3.bf16.msra.mxu0 %v185_v2  ;;  %p238_p5 = por %p237_p4, %p236_p3 }
  0x2e   :  { %v51_v4 = vld [vmem:[#allocation7] sm:$0xff]  ;;  %v52_v6 = vld [vmem:[#allocation7 + $0x8] sm:$0xff]  ;;  %p239_p6 = pnand %p238_p5, %p232_p2 }
  0x2f   :  { %172 = vmatmul.mubr.msk.bf16.vlgmr.msra.gmra.mrb[0].mxu0 %vm48_vm0, %v186_v3 }
 0x102   :  { %v114_v5 = vpop.f32.mrb[0].mxu0 }
 0x103   :  { %v121_v7 = vadd.f32 %v114_v5, %v51_v4  ;;  %v173_v8 = vpop.f32.mrb[1].mxu0 }
 0x104   :  { %v117_v9 = vpop.f32.mrb[2].mxu0 }
 0x105   :  { %123 = vst.msk [vmem:[#allocation7] sm:$0xff] %vm48_vm0, %v121_v7  ;;  %v122_v10 = vadd.f32 %v117_v9, %v52_v6  ;;  %v174_v11 = vpop.f32.mrb[3].mxu0 }
 0x107   :  { %124 = vst.msk [vmem:[#allocation7 + $0x8] sm:$0xff] %vm48_vm0, %v122_v10 }
 0x10c   :  { %v128_v13 = vld [vmem:[#allocation7] sm:$0xff] }
 0x10d   :  { %v137_v14 = vadd.f32 %v163_v12, %v128_v13 }
 0x10e   :  { %v129_v15 = vld [vmem:[#allocation7 + $0x8] sm:$0xff] }
 0x10f   :  { %v138_v16 = vadd.f32 %v163_v12, %v129_v15  ;;  %139 = vst.msk [vmem:[#allocation7] sm:$0xff] %vm48_vm0, %v137_v14 }
 0x111   :  { %140 = vst.msk [vmem:[#allocation7 + $0x8] sm:$0xff] %vm48_vm0, %v138_v16 }
 0x112   :  { %242 = shalt.err (!%p239_p6)
}
 0x113   :  { %s243_s15 = scalar_lea.hbm %s337_s3, 256 }
 0x114   :  { %p244_p7 = scmp.ne.s32.totalorder %s337_s3, %s243_s15  ;;  %p247_p8 = scmp.lt.u32.totalorder %s243_s15, %s337_s3 }
 0x116   :  { %p249_p9 = pnand %p247_p8, %p244_p7 }
 0x118   :  { %252 = shalt.err (!%p249_p9)
}
 0x119   :  { %s266_s20 = smov 128   ;;  %s267_s21 = smov 8  }
 0x11a   :  { %152 = dma.vmem_to_hbm [thread:$0]  %s147_s12, 256, %s337_s3, [#allocation4], %s266_s20, %s266_s20, %s267_s21  }
 0x11b   :  { %257 = dma.done.wait [#allocation4], 256  }
 0x11c   :  { %258 = vsyncadd [#allocation4], 4294967040 }
 0x11d   :  { %156 = vsyncpa [#allocation3], 1 }
 0x11e   :  { %157 = vsyncpa [#allocation6], 1 }
 0x11f   :  { %158 = vsyncpa [#allocation4], 1 }

</bundles_post_ra>
